<compile_context>
chip_gen: v5e
topology: v5e:2x2
jax: 0.10.0
libtpu: 0.0.40
codegen_flags: <defaults>
</compile_context>

<pallas_src>
import jax
import jax.numpy as jnp
from jax.experimental import pallas as pl
from jax.experimental.pallas import tpu as pltpu

SMOOTH = 1.0
LANES = 128
SUBLANES = 8
MAX_TILE_ROWS = 1024      # (1024,128) f32 tile = 512 KiB; 2 in x 2 buf = 2 MiB total
NUM_PARALLEL = 2          # leading 'parallel' grid axis (covers v7x's 2 TensorCores)
PAD_LOGIT = -1e30         # sigmoid(PAD_LOGIT) == 0.0 exactly -> padding is neutral


def _round_up(x: int, m: int) -> int:
    return ((x + m - 1) // m) * m


def _dice_kernel(p_ref, t_ref, inter_ref, den_ref):
    step = pl.program_id(1)

    # Output blocks are resident across the 'arbitrary' axis -> accumulators.
    @pl.when(step == 0)
    def _init():
        inter_ref[...] = jnp.zeros_like(inter_ref)
        den_ref[...] = jnp.zeros_like(den_ref)

    x = p_ref[...].astype(jnp.float32)      # cast in-kernel (inputs may be bf16)
    t = t_ref[...].astype(jnp.float32)
    p = jax.nn.sigmoid(x)                   # exp lands on the EUP slot; kernel is DMA-bound

    # Fold the (tile_rows, 128) tile into (8, 128) vreg-shaped partial sums:
    # adds across vregs (VPU), no per-step cross-lane XLU reduction.
    pt = (p * t).reshape(-1, SUBLANES, LANES).sum(axis=0)
    d = (p + t).reshape(-1, SUBLANES, LANES).sum(axis=0)
    inter_ref[0] += pt
    den_ref[0] += d


def dice_loss(prediction: jax.Array, target: jax.Array) -> jax.Array:
    """Dice loss over the whole tensor. `prediction` are logits; `target` in [0,1]."""
    assert prediction.shape == target.shape
    total = prediction.size

    rows = pl.cdiv(total, LANES)
    rows_per_core = pl.cdiv(rows, NUM_PARALLEL)
    tile_rows = min(MAX_TILE_ROWS, _round_up(rows_per_core, SUBLANES))
    steps = pl.cdiv(rows, NUM_PARALLEL * tile_rows)
    rows_padded = NUM_PARALLEL * steps * tile_rows
    padded_total = rows_padded * LANES

    p_flat = prediction.reshape(-1)
    t_flat = target.reshape(-1)
    pad = padded_total - total
    if pad:
        # sigmoid(PAD_LOGIT) == 0 and target pad == 0 -> zero contribution to all sums.
        p_flat = jnp.pad(p_flat, (0, pad), constant_values=PAD_LOGIT)
        t_flat = jnp.pad(t_flat, (0, pad), constant_values=0)
    p2d = p_flat.reshape(rows_padded, LANES)
    t2d = t_flat.reshape(rows_padded, LANES)

    grid = (NUM_PARALLEL, steps)

    def in_map(p, i):
        return (p * steps + i, 0)

    inter_part, den_part = pl.pallas_call(
        _dice_kernel,
        out_shape=(
            jax.ShapeDtypeStruct((NUM_PARALLEL, SUBLANES, LANES), jnp.float32),
            jax.ShapeDtypeStruct((NUM_PARALLEL, SUBLANES, LANES), jnp.float32),
        ),
        grid_spec=pltpu.PrefetchScalarGridSpec(
            num_scalar_prefetch=0,
            grid=grid,
            in_specs=[
                pl.BlockSpec((tile_rows, LANES), in_map),
                pl.BlockSpec((tile_rows, LANES), in_map),
            ],
            out_specs=[
                pl.BlockSpec((1, SUBLANES, LANES), lambda p, i: (p, 0, 0)),
                pl.BlockSpec((1, SUBLANES, LANES), lambda p, i: (p, 0, 0)),
            ],
        ),
        compiler_params=pltpu.CompilerParams(
            dimension_semantics=("parallel", "arbitrary"),
        ),
    )(p2d, t2d)

    # Final cross-lane reduce + dice formula in the wrapper (tiny, runs once).
    intersection = jnp.sum(inter_part)
    denominator = jnp.sum(den_part)
    return 1.0 - (2.0 * intersection + SMOOTH) / (denominator + SMOOTH)


def _dice_loss_ref(prediction, target):
    p = jax.nn.sigmoid(prediction.astype(jnp.float32))
    t = target.astype(jnp.float32)
    inter = jnp.sum(p * t)
    return 1.0 - (2.0 * inter + SMOOTH) / (jnp.sum(p) + jnp.sum(t) + SMOOTH)


if __name__ == "__main__":
    key = jax.random.PRNGKey(0)
    k1, k2, k3, k4 = jax.random.split(key, 4)

    # NCHW inputs, matching the PyTorch module's convention.
    x_shape = (2, 4, 16, 16)
    prediction = jax.random.normal(k1, x_shape, dtype=jnp.float32)  # logits
    target = (jax.random.uniform(k2, x_shape) > 0.5).astype(jnp.float32)  # binary mask

    loss = dice_loss(prediction, target)
    jax.block_until_ready(loss)
    ref = _dice_loss_ref(prediction, target)
    assert jnp.allclose(loss, ref, atol=1e-5, rtol=1e-5), (loss, ref)

    # Exercise the padding path with a non-multiple-of-(8*128) shape.
    odd_shape = (2, 3, 15, 17)
    pred2 = jax.random.normal(k3, odd_shape, dtype=jnp.float32)
    tgt2 = (jax.random.uniform(k4, odd_shape) > 0.5).astype(jnp.float32)
    loss2 = dice_loss(pred2, tgt2)
    jax.block_until_ready(loss2)
    ref2 = _dice_loss_ref(pred2, tgt2)
    assert jnp.allclose(loss2, ref2, atol=1e-5, rtol=1e-5), (loss2, ref2)

    print("KERNEL_OK")
</pallas_src>

<mosaic_0001>
module attributes {stable_mosaic.version = 11 : i64} {
  func.func @_dice_kernel(%arg0: i32, %arg1: i32, %arg2: memref<8x128xf32, #tpu.memory_space<vmem>>, %arg3: memref<8x128xf32, #tpu.memory_space<vmem>>, %arg4: memref<1x8x128xf32, #tpu.memory_space<vmem>>, %arg5: memref<1x8x128xf32, #tpu.memory_space<vmem>>) attributes {dimension_semantics = [#tpu.dimension_semantics<parallel>, #tpu.dimension_semantics<arbitrary>], iteration_bounds = array<i64: 2, 1>, scalar_prefetch = 0 : i64, scratch_operands = 0 : i64, tpu.core_type = #tpu.core_type<tc>, window_params = [{transform_indices = @transform_0, window_bounds = array<i64: 8, 128>}, {transform_indices = @transform_1, window_bounds = array<i64: 8, 128>}, {transform_indices = @transform_2, window_bounds = array<i64: 1, 8, 128>}, {transform_indices = @transform_3, window_bounds = array<i64: 1, 8, 128>}]} {
    %c0_i32 = arith.constant 0 : i32
    %0 = arith.cmpi eq, %arg1, %c0_i32 : i32
    %1 = arith.extui %0 : i1 to i32
    %c0_i32_0 = arith.constant 0 : i32
    %2 = arith.cmpi ne, %1, %c0_i32_0 : i32
    scf.if %2 {
      %cst_18 = arith.constant 0.000000e+00 : f32
      %28 = vector.broadcast %cst_18 : f32 to vector<1x8x128xf32>
      %c0_19 = arith.constant 0 : index
      %c0_20 = arith.constant 0 : index
      %c0_21 = arith.constant 0 : index
      %29 = vector.load %arg4[%c0_19, %c0_20, %c0_21] : memref<1x8x128xf32, #tpu.memory_space<vmem>>, vector<1x8x128xf32>
      tpu.vector_store %arg4[%c0_19, %c0_20, %c0_21], %28 {strides = array<i32>} : memref<1x8x128xf32, #tpu.memory_space<vmem>>, vector<1x8x128xf32>,
      %cst_22 = arith.constant 0.000000e+00 : f32
      %30 = vector.broadcast %cst_22 : f32 to vector<1x8x128xf32>
      %c0_23 = arith.constant 0 : index
      %c0_24 = arith.constant 0 : index
      %c0_25 = arith.constant 0 : index
      %31 = vector.load %arg5[%c0_23, %c0_24, %c0_25] : memref<1x8x128xf32, #tpu.memory_space<vmem>>, vector<1x8x128xf32>
      tpu.vector_store %arg5[%c0_23, %c0_24, %c0_25], %30 {strides = array<i32>} : memref<1x8x128xf32, #tpu.memory_space<vmem>>, vector<1x8x128xf32>,
    } else {
    }
    %c0 = arith.constant 0 : index
    %c0_1 = arith.constant 0 : index
    %3 = vector.load %arg2[%c0, %c0_1] : memref<8x128xf32, #tpu.memory_space<vmem>>, vector<8x128xf32>
    %c0_2 = arith.constant 0 : index
    %c0_3 = arith.constant 0 : index
    %4 = vector.load %arg3[%c0_2, %c0_3] : memref<8x128xf32, #tpu.memory_space<vmem>>, vector<8x128xf32>
    %5 = arith.negf %3 : vector<8x128xf32>
    %6 = math.exp %5 : vector<8x128xf32>
    %cst = arith.constant 1.000000e+00 : f32
    %7 = vector.broadcast %cst : f32 to vector<8x128xf32>
    %8 = arith.addf %7, %6 : vector<8x128xf32>
    %9 = arith.divf %7, %8 : vector<8x128xf32>
    %10 = arith.mulf %9, %4 : vector<8x128xf32>
    %11 = vector.shape_cast %10 : vector<8x128xf32> to vector<1x8x128xf32>
    %cst_4 = arith.constant dense<0.000000e+00> : vector<8x128xf32>
    %12 = vector.multi_reduction <add>, %11, %cst_4 [0] : vector<1x8x128xf32> to vector<8x128xf32>
    %13 = arith.addf %9, %4 : vector<8x128xf32>
    %14 = vector.shape_cast %13 : vector<8x128xf32> to vector<1x8x128xf32>
    %cst_5 = arith.constant dense<0.000000e+00> : vector<8x128xf32>
    %15 = vector.multi_reduction <add>, %14, %cst_5 [0] : vector<1x8x128xf32> to vector<8x128xf32>
    %c0_6 = arith.constant 0 : index
    %c0_7 = arith.constant 0 : index
    %c0_8 = arith.constant 0 : index
    %16 = vector.load %arg4[%c0_6, %c0_7, %c0_8] : memref<1x8x128xf32, #tpu.memory_space<vmem>>, vector<1x8x128xf32>
    %17 = vector.shape_cast %16 : vector<1x8x128xf32> to vector<8x128xf32>
    %18 = arith.addf %17, %12 : vector<8x128xf32>
    %c0_9 = arith.constant 0 : index
    %c0_10 = arith.constant 0 : index
    %c0_11 = arith.constant 0 : index
    %19 = vector.load %arg4[%c0_9, %c0_10, %c0_11] : memref<1x8x128xf32, #tpu.memory_space<vmem>>, vector<1x8x128xf32>
    %20 = vector.shape_cast %19 : vector<1x8x128xf32> to vector<8x128xf32>
    %21 = vector.shape_cast %18 : vector<8x128xf32> to vector<1x8x128xf32>
    tpu.vector_store %arg4[%c0_9, %c0_10, %c0_11], %21 {strides = array<i32>} : memref<1x8x128xf32, #tpu.memory_space<vmem>>, vector<1x8x128xf32>,
    %c0_12 = arith.constant 0 : index
    %c0_13 = arith.constant 0 : index
    %c0_14 = arith.constant 0 : index
    %22 = vector.load %arg5[%c0_12, %c0_13, %c0_14] : memref<1x8x128xf32, #tpu.memory_space<vmem>>, vector<1x8x128xf32>
    %23 = vector.shape_cast %22 : vector<1x8x128xf32> to vector<8x128xf32>
    %24 = arith.addf %23, %15 : vector<8x128xf32>
    %c0_15 = arith.constant 0 : index
    %c0_16 = arith.constant 0 : index
    %c0_17 = arith.constant 0 : index
    %25 = vector.load %arg5[%c0_15, %c0_16, %c0_17] : memref<1x8x128xf32, #tpu.memory_space<vmem>>, vector<1x8x128xf32>
    %26 = vector.shape_cast %25 : vector<1x8x128xf32> to vector<8x128xf32>
    %27 = vector.shape_cast %24 : vector<8x128xf32> to vector<1x8x128xf32>
    tpu.vector_store %arg5[%c0_15, %c0_16, %c0_17], %27 {strides = array<i32>} : memref<1x8x128xf32, #tpu.memory_space<vmem>>, vector<1x8x128xf32>,
    return
  }
  func.func @transform_0(%arg0: i32, %arg1: i32) -> (i32, i32) {
    %c1_i32 = arith.constant 1 : i32
    %0 = arith.muli %arg0, %c1_i32 : i32
    %1 = arith.addi %0, %arg1 : i32
    %c0_i32 = arith.constant 0 : i32
    %c0_i32_0 = arith.constant 0 : i32
    return %1, %c0_i32 : i32, i32
  }
  func.func @transform_1(%arg0: i32, %arg1: i32) -> (i32, i32) {
    %c1_i32 = arith.constant 1 : i32
    %0 = arith.muli %arg0, %c1_i32 : i32
    %1 = arith.addi %0, %arg1 : i32
    %c0_i32 = arith.constant 0 : i32
    %c0_i32_0 = arith.constant 0 : i32
    return %1, %c0_i32 : i32, i32
  }
  func.func @transform_2(%arg0: i32, %arg1: i32) -> (i32, i32, i32) {
    %c0_i32 = arith.constant 0 : i32
    %c0_i32_0 = arith.constant 0 : i32
    %c0_i32_1 = arith.constant 0 : i32
    return %arg0, %c0_i32, %c0_i32_0 : i32, i32, i32
  }
  func.func @transform_3(%arg0: i32, %arg1: i32) -> (i32, i32, i32) {
    %c0_i32 = arith.constant 0 : i32
    %c0_i32_0 = arith.constant 0 : i32
    %c0_i32_1 = arith.constant 0 : i32
    return %arg0, %c0_i32, %c0_i32_0 : i32, i32, i32
  }
}

</mosaic_0001>

<bundles_post_ra>
// kernel: tpu_custom_call.1
= control target key start
LH: loop header
LB: loop body
LE: loop exit
PB: predicated region body
PF: predicated region fallthrough
CT: control target
= control target key end

     0   :  { %9 = vsyncpa [#allocation3], 0  ;;  %s923_s0 = inlined_call_operand.hbm [shape: f32[16,128], index: 0, kind: input, shape index: {}]   ;;  %s924_s1 = inlined_call_operand.hbm [shape: f32[16,128], index: 1, kind: input, shape index: {}]   ;;  %s925_s2 = inlined_call_operand.hbm [shape: f32[2,8,128], index: 2, kind: output, shape index: {0}]   ;;  %s926_s3 = inlined_call_operand.hbm [shape: f32[2,8,128], index: 3, kind: output, shape index: {1}]  }
   0x1   :  { %11 = vsyncpa [#allocation3 + $0x1], 0 }
   0x2   :  { %12 = vsyncpa [#allocation6], 0 }
   0x3   :  { %14 = vsyncpa [#allocation6 + $0x1], 0 }
   0x4   :  { %15 = vsyncpa [#allocation4], 0 }
   0x5   :  { %17 = vsyncpa [#allocation4 + $0x1], 0 }
   0x6   :  { %18 = vsyncpa [#allocation9], 0 }
   0x7   :  { %20 = vsyncpa [#allocation9 + $0x1], 0  ;;  %s763_s12 = smov 0   ;;  %s765_s13 = smov 0  }
   0x8   :  { %s767_s14 = smov 0   ;;  %s769_s15 = smov 0  }
   0x9   :  { %s771_s16 = smov 0   ;;  %s773_s17 = smov 0  }
   0xa LB: > { %s466_s18 = sadd.s32 4294967295, %s741_s17   ;;  %s467_s19 = sadd.s32 4294967294, %s741_s17   ;;  %s741_s17 = sphi %s773_s17, %s26_s17   ;;  %s737_s16 = sphi %s771_s16, %s935_s16   ;;  %s733_s15 = sphi %s769_s15, %s934_s15   ;;  %s729_s14 = sphi %s767_s14, %s933_s14   ;;  %s725_s13 = sphi %s765_s13, %s932_s13   ;;  %s721_s12 = sphi %s763_s12, %s931_s12  }
   0xb   : > { %s38_s20 = sadd.s32 1, %s737_s16  ;;  %s47_s21 = sadd.s32 1, %s729_s14 }
   0xc   : > { %p40_p0 = scmp.ge.s32.totalorder %s38_s20, 2  ;;  %p54_p1 = scmp.ne.s32.totalorder %s729_s14, %s725_s13 }
   0xd   : > { %p55_p2 = scmp.eq.s32.totalorder %s741_s17, 0  ;;  %p60_p3 = scmp.ne.s32.totalorder %s725_s13, %s721_s12 }
   0xe   : > { %s937_s20 = smov (%p40_p0, %s38_s20), 0  ;;  %p61_p5 = scmp.eq.s32.totalorder %s466_s18, 0 }
   0xf   : > { %p804_p4 = por %p55_p2, %p54_p1  ;;  %s44_s23 = ssub.s32 %s737_s16, %s937_s20 }
  0x10   : > { %p112_p6 = scmp.eq.s32.totalorder %s466_s18, 1  ;;  %p45_p7 = scmp.eq.s32.totalorder %s44_s23, 0 }
  0x11   : > { %p810_p8 = por %p61_p5, %p60_p3  ;;  %p118_p10 = scmp.eq.s32.totalorder %s467_s19, 1 }
  0x12   : > { %p814_p9 = por %p112_p6, %p54_p1  ;;  %p469_p12 = scmp.ge.s32.totalorder %s741_s17, 2 }
  0x13   : > { %s819_s26 = scalar_select %p45_p7, %s729_s14, %s47_s21  }
  0x14   : > { %p821_p11 = por %p118_p10, %p60_p3  ;;  %p508_p13 = scmp.lt.s32.totalorder %s741_s17, 2 }
  0x15   : > { %s164_s28 = sand.u32 1, %s729_s14   ;;  %s471_s30 = sshll.u32 %s737_s16, 3 }
  0x16   : > { %s470_s29 = sshll.u32 %s164_s28, 3  ;;  %s173_s6 = scalar_lea.hbm %s923_s0, %s471_s30 }
  0x17   : > { %s168_s7 = scalar_lea.vmem [#allocation2], %s470_s29  ;;  %s175_s9 = sshll.u32 %s173_s6, 4  ;;  %s176_s9 = int_to_ptr.hbm [resolvable:$true] %s175_s9 }
  0x18   : > { %s177_s8 = sshll.u32 %s168_s7, 4  ;;  %p495_p0 = pnand %p508_p13, %p804_p4  ;;  %s178_s8 = int_to_ptr.vmem [resolvable:$true] %s177_s8 }
  0x19   : > { %p474_p1 = scmp.ge.s32.totalorder %s741_s17, 1  ;;  %p202_p2 = scmp.lt.s32.totalorder %s741_s17, 3 }
  0x1a   : > { %s165_s10 = scalar_lea.sflag [#allocation3], %s164_s28  ;;  %s193_s19 = scalar_lea.hbm %s924_s1, %s471_s30 }
  0x1b   : > { %497 = dma.hbm_to_vmem [thread:$0]  (!%p495_p0), %s176_s9, 128, %s178_s8, %s165_s10  }
  0x1c   : > { %p203_p3 = pnand %p474_p1, %p202_p2  ;;  %s188_s21 = scalar_lea.vmem [#allocation5], %s470_s29 }
  0x1d   : > { %s197_s23 = sshll.u32 %s188_s21, 4  ;;  %s195_s4 = sshll.u32 %s193_s19, 4  ;;  %s198_s23 = int_to_ptr.vmem [resolvable:$true] %s197_s23  ;;  %s196_s4 = int_to_ptr.hbm [resolvable:$true] %s195_s4 }
  0x1e   : > { %s185_s5 = scalar_lea.sflag [#allocation6], %s164_s28  ;;  %206 = sbr.rel (%p203_p3) target bundleno = 85 (0x55), region = 28 }
  0x1f   : > { %500 = dma.hbm_to_vmem [thread:$0]  (!%p495_p0), %s196_s4, 128, %s198_s23, %s185_s5  }
  0x20   : > { %s840_s22 = sand.u32 (!%p203_p3), 1, %s725_s13  }
  0x21   : > { %s843_s6 = sshll.u32 (!%p203_p3), %s840_s22, 3  ;;  %s209_s7 = scalar_lea.sflag (!%p203_p3), [#allocation3], %s840_s22 }
  0x22   : > { %s212_s8 = scalar_lea.vmem (!%p203_p3), [#allocation2], %s843_s6 }
  0x23   : > { %704 = dma.done.wait (%p810_p8), %s209_s7, 128  }
  0x24   : > { %706 = vsyncadd (%p810_p8), %s209_s7, 4294967168  ;;  %s219_s28 = scalar_lea.sflag [#allocation6], %s840_s22  ;;  %s222_s29 = scalar_lea.vmem [#allocation5], %s843_s6 }
  0x25   : > { %708 = dma.done.wait (%p810_p8), %s219_s28, 128  }
  0x26   : > { %710 = vsyncadd (%p810_p8), %s219_s28, 4294967168  ;;  %v264_v0 = vld [vmem:[%s212_s8] sm:$0xff]  ;;  %s482_s30 = sshll.u32 %s733_s15, 3  ;;  %v265_v12 = vld [vmem:[%s222_s29] sm:$0xff]  ;;  %s248_s21 = scalar_lea.vmem [#allocation7], %s843_s6 }
  0x27   : > { %v479_v1 = vmul.f32 -1.442695, %v264_v0  ;;  %s311_s10 = scalar_lea.hbm %s925_s2, %s482_s30  ;;  %s325_s19 = scalar_lea.hbm %s926_s3, %s482_s30 }
  0x28   : > { %s865_s23 = sshll.u32 %s248_s21, 4  ;;  %s315_s15 = sshll.u32 %s311_s10, 4  ;;  %s314_s23 = int_to_ptr.vmem [resolvable:$true] %s865_s23  ;;  %s316_s15 = int_to_ptr.hbm [resolvable:$true] %s315_s15 }
  0x29   : > { %559 = vpow2.f32 %v479_v1  ;;  %s255_s4 = scalar_lea.vmem [#allocation8], %s843_s6  ;;  %s329_s7 = sshll.u32 %s325_s19, 4  ;;  %s872_s7 = int_to_ptr.hbm [resolvable:$true] %s329_s7 }
  0x2a   : > { %s868_s5 = sshll.u32 %s255_s4, 4  ;;  %s296_s8 = scalar_lea.sflag [#allocation4], %s840_s22  ;;  %s328_s5 = int_to_ptr.vmem [resolvable:$true] %s868_s5 }
  0x2b   : > { %s637_s28 = sshra.s32 %s316_s15, 4  ;;  %s643_s24 = scalar_lea.hbm %s925_s2, 16  ;;  %s638_s28 = int_to_ptr.hbm [resolvable:$true] %s637_s28 }
  0x2c   : > { %s639_s29 = scalar_lea.hbm %s638_s28, 8  ;;  %p644_p7 = scmp.lt.s32.totalorder %s638_s28, %s925_s2 }
  0x2d   : > { %p640_p4 = scmp.ne.s32.totalorder %s638_s28, %s639_s29  ;;  %p645_p8 = scmp.lt.s32.totalorder %s643_s24, %s639_s29 }
  0x2f   : > { %v560_v2 = vpop.eup %559  ;;  %p641_p5 = pnand %p640_p4, %p814_p9  ;;  %p646_p10 = por %p645_p8, %p644_p7 }
  0x30   : > { %v269_v3 = vadd.f32 1.0, %v560_v2 }
  0x31   : > { %p642_p6 = pneg %p641_p5 }
  0x32   : > { %561 = vrcp.f32 %v269_v3  ;;  %v281_v6 = vand.u32 2147483648, %v269_v3  ;;  %vm275_vm0 = vweird.f32 %v269_v3  ;;  %v279_v8 = vand.u32 2147483647, %v269_v3 }
  0x33   : > { %p647_p13 = pnand %p646_p10, %p642_p6 }
  0x34   : > { %v282_v10 = vor.u32 1.1754944e-38, %v281_v6  ;;  %vm280_vm3 = vcmp.eq.f32.partialorder %v279_v8, 8.507059e+37 }
  0x38   : > { %v562_v4 = vpop.eup %561 }
  0x39   : > { %v271_v5 = vmul.f32 %v562_v4, %v269_v3  ;;  %vm276_vm1 = vweird.f32 %v562_v4 }
  0x3a   : > { %vm277_vm2 = vmor %vm275_vm0, %vm276_vm1 }
  0x3b   : > { %v272_v7 = vsub.f32 1.0, %v271_v5 }
  0x3d   : > { %v273_v9 = vmul.f32 %v562_v4, %v272_v7 }
  0x3f   : > { %v274_v11 = vadd.f32 %v562_v4, %v273_v9 }
  0x41   : > { %v278_v13 = vsel %vm277_vm2, %v562_v4, %v274_v11 }
  0x42   : > { %v283_v14 = vsel %vm280_vm3, %v282_v10, %v278_v13 }
  0x43   : > { %v285_v15 = vmul.f32 %v283_v14, %v265_v12  ;;  %v287_v16 = vadd.f32 %v283_v14, %v265_v12 }
  0x45   : > { %291 = vst [vmem:[%s248_s21] sm:$0xff] %v285_v15 }
  0x46   : > { %294 = vst [vmem:[%s255_s4] sm:$0xff] %v287_v16 }
  0x47   : > { %650 = shalt.err (!%p647_p13)
}
  0x48   : > { %490 = dma.vmem_to_hbm [thread:$0]  (%p814_p9), %s314_s23, 128, %s316_s15, %s296_s8  }
  0x49   : > { %s301_s11 = scalar_lea.sflag [#allocation9], %s840_s22  ;;  %s665_s18 = sshra.s32 %s872_s7, 4  ;;  %s666_s18 = int_to_ptr.hbm [resolvable:$true] %s665_s18 }
  0x4a   : > { %s667_s19 = scalar_lea.hbm %s666_s18, 8  ;;  %s671_s28 = scalar_lea.hbm %s926_s3, 16 }
  0x4b   : > { %p668_p0 = scmp.ne.s32.totalorder %s666_s18, %s667_s19  ;;  %p672_p3 = scmp.lt.s32.totalorder %s666_s18, %s926_s3 }
  0x4c   : > { %p673_p4 = scmp.lt.s32.totalorder %s671_s28, %s667_s19 }
  0x4d   : > { %p669_p1 = pnand %p668_p0, %p814_p9 }
  0x4e   : > { %p674_p5 = por %p673_p4, %p672_p3 }
  0x4f   : > { %p670_p2 = pneg %p669_p1 }
  0x51   : > { %p675_p6 = pnand %p674_p5, %p670_p2 }
  0x53   : > { %678 = shalt.err (!%p675_p6)
}
  0x54   : > { %491 = dma.vmem_to_hbm [thread:$0]  (%p814_p9), %s328_s5, 128, %s872_s7, %s301_s11  }
  0x55 PF: > { %s341_s22 = sand.u32 1, %s721_s12   ;;  %p502_p7 = pnand %p469_p12, %p821_p11 }
  0x56   : > { %s342_s23 = scalar_lea.sflag [#allocation4], %s341_s22 }
  0x57   : > { %p503_p8 = pneg %p502_p7 }
  0x59   : > { %712 = dma.done.wait (%p503_p8), %s342_s23, 128  }
  0x5a   : > { %714 = vsyncadd (%p503_p8), %s342_s23, 4294967168  ;;  %s352_s15 = scalar_lea.sflag [#allocation9], %s341_s22 }
  0x5b   : > { %716 = dma.done.wait (%p503_p8), %s352_s15, 128  }
  0x5c   : > { %718 = vsyncadd (%p503_p8), %s352_s15, 4294967168  ;;  %s26_s17 = sadd.s32 1, %s741_s17   ;;  %s931_s12 = smov %s725_s13 }
  0x5d   : > { %p23_p10 = scmp.ge.s32.totalorder %s26_s17, 4   ;;  %s932_s13 = smov %s729_s14 }
  0x5e   : > { %s933_s14 = smov %s819_s26  ;;  %s934_s15 = smov %s737_s16 }
  0x5f   : > { %s935_s16 = smov %s937_s20  ;;  %25 = sbr.rel (!%p23_p10) target bundleno = 10 (0xa), region = 107 }
  0x64   :  { %358 = vsyncpa [#allocation3], 1 }
  0x65   :  { %360 = vsyncpa [#allocation3 + $0x1], 1 }
  0x66   :  { %361 = vsyncpa [#allocation6], 1 }
  0x67   :  { %363 = vsyncpa [#allocation6 + $0x1], 1 }
  0x68   :  { %364 = vsyncpa [#allocation4], 1 }
  0x69   :  { %366 = vsyncpa [#allocation4 + $0x1], 1 }
  0x6a   :  { %367 = vsyncpa [#allocation9], 1 }
  0x6b   :  { %369 = vsyncpa [#allocation9 + $0x1], 1 }

</bundles_post_ra>
